<compile_context>
chip_gen: v7x
topology: tpu7x:2x2x1
jax: 0.10.0
libtpu: 0.0.40
codegen_flags: <defaults>
</compile_context>

<pallas_src>
import math

import jax
import jax.numpy as jnp
from jax.experimental import pallas as pl
from jax.experimental.pallas import tpu as pltpu


# ---------------------------------------------------------------------------
# Parameter setup (plain JAX glue, mirrors InducedNormLinear construction)
# ---------------------------------------------------------------------------

def init_lipschitz_mlp_params(key, channels, lipschitz_const=0.97,
                              max_lipschitz_iter=5, init_zeros=True):
    """Deterministically initialize Swish betas and InducedNormLinear weights,
    then apply the spectral-norm based Lipschitz normalization to the weights."""
    n_layers = len(channels) - 1
    betas = jnp.full((n_layers,), 0.5, dtype=jnp.float32)   # Swish beta init

    weights_hat = []
    biases = []
    for i in range(n_layers):
        in_f, out_f = channels[i], channels[i + 1]
        key, kw, kb, ku, kv = jax.random.split(key, 5)

        # kaiming_uniform_(a=sqrt(5)) equivalent bound
        bound_w = math.sqrt(6.0 / ((1.0 + 5.0) * in_f))
        w = jax.random.uniform(kw, (out_f, in_f), jnp.float32, -bound_w, bound_w)
        if init_zeros and i == n_layers - 1:
            w = w / 1000.0                                   # zero_init of last layer

        bound_b = 1.0 / math.sqrt(in_f)
        b = jax.random.uniform(kb, (out_f,), jnp.float32, -bound_b, bound_b)

        # power iteration (domain=2, codomain=2 -> spectral norm)
        u = jax.random.normal(ku, (out_f,), jnp.float32)
        u = u / jnp.linalg.norm(u)
        v = jax.random.normal(kv, (in_f,), jnp.float32)
        v = v / jnp.linalg.norm(v)
        for _ in range(max_lipschitz_iter):
            v = w.T @ u
            v = v / jnp.linalg.norm(v)
            u = w @ v
            u = u / jnp.linalg.norm(u)
        sigma = u @ (w @ v)
        factor = jnp.maximum(1.0, sigma / lipschitz_const)
        w_hat = w / factor

        weights_hat.append(w_hat)
        biases.append(b)

    return betas, weights_hat, biases


# ---------------------------------------------------------------------------
# Pallas kernel: fused Swish + Linear stack (feature-major, batch on lanes)
# ---------------------------------------------------------------------------

def _make_mlp_kernel(n_layers):
    def kernel(x_ref, sp_ref, *rest):
        # rest = (w0, b0, w1, b1, ..., o_ref)
        #   wi: (out_i, in_i)  already scaled by 1/1.1 and the Lipschitz factor
        #   bi: (out_i, 1)
        o_ref = rest[-1]
        wb = rest[:-1]
        h = x_ref[...]                              # (in_feat, TILE_B) f32
        for i in range(n_layers):
            w_ref = wb[2 * i]
            b_ref = wb[2 * i + 1]
            sp = sp_ref[i]                          # softplus(beta_i), SMEM scalar
            z = sp * h
            sig = 1.0 / (1.0 + jnp.exp(-z))         # sigmoid (exp on EUP)
            h = h * sig                             # Swish; the /1.1 is folded into W
            h = jnp.dot(w_ref[...], h,
                        preferred_element_type=jnp.float32) + b_ref[...]
        o_ref[...] = h
    return kernel


def _round_up(n, m):
    return ((n + m - 1) // m) * m


def lipschitz_mlp_forward(x, betas, weights_hat, biases, *, max_tile_b=512):
    """x: (batch, channels[0]) float32 -> (batch, channels[-1]) float32."""
    n_layers = len(weights_hat)
    in_features = weights_hat[0].shape[1]
    out_features = weights_hat[-1].shape[0]
    batch = x.shape[0]

    # ---- parameter glue (plain JAX, outside the hot loop) -----------------
    # fold the Swish 1/1.1 output scale into the Lipschitz-normalized weights,
    # precompute softplus(beta); weights stay in PyTorch (out, in) layout.
    sp_betas = jax.nn.softplus(betas.astype(jnp.float32))        # (n_layers,)
    flat_args = []
    for w, b in zip(weights_hat, biases):
        flat_args.append(jnp.asarray(w, jnp.float32) * (1.0 / 1.1))
        flat_args.append(jnp.asarray(b, jnp.float32).reshape(-1, 1))

    # ---- feature-major activations: batch on the 128-lane axis ------------
    tile_b = min(max_tile_b, _round_up(batch, 128))              # multiple of 128
    padded_batch = _round_up(batch, tile_b)
    x_t = jnp.zeros((in_features, padded_batch), jnp.float32)
    x_t = x_t.at[:, :batch].set(x.astype(jnp.float32).T)         # zero-pad: Swish(0)=0

    grid = (padded_batch // tile_b,)

    in_specs = [
        pl.BlockSpec((in_features, tile_b), lambda i: (0, i)),            # x tile (pipelined)
        pl.BlockSpec(memory_space=pltpu.MemorySpace.SMEM),                # softplus(betas)
    ]
    for w, b in zip(weights_hat, biases):
        in_specs.append(pl.BlockSpec(w.shape, lambda i: (0, 0)))          # resident weight
        in_specs.append(pl.BlockSpec((b.shape[0], 1), lambda i: (0, 0)))  # resident bias

    out_spec = pl.BlockSpec((out_features, tile_b), lambda i: (0, i))

    out_t = pl.pallas_call(
        _make_mlp_kernel(n_layers),
        out_shape=jax.ShapeDtypeStruct((out_features, padded_batch), jnp.float32),
        grid=grid,
        in_specs=in_specs,
        out_specs=out_spec,
        compiler_params=pltpu.CompilerParams(
            dimension_semantics=("parallel",),
            vmem_limit_bytes=32 * 1024 * 1024),
    )(x_t, sp_betas, *flat_args)

    # drop batch padding, back to (batch, out_features)
    return out_t[:, :batch].T


# ---------------------------------------------------------------------------
# Pure-JAX reference (original, unfolded semantics) for a correctness check
# ---------------------------------------------------------------------------

def reference_forward(x, betas, weights_hat, biases):
    h = x
    for i, (w, b) in enumerate(zip(weights_hat, biases)):
        h = h * jax.nn.sigmoid(h * jax.nn.softplus(betas[i])) / 1.1
        h = h @ w.T + b
    return h


if __name__ == "__main__":
    key = jax.random.PRNGKey(0)
    channels = [16, 32, 32, 16]          # channels list of the LipschitzMLP
    batch = 8

    key, kp, kx = jax.random.split(key, 3)
    betas, weights_hat, biases = init_lipschitz_mlp_params(
        kp, channels, lipschitz_const=0.97, max_lipschitz_iter=5, init_zeros=True)

    x = jax.random.normal(kx, (batch, channels[0]), jnp.float32)

    out = lipschitz_mlp_forward(x, betas, weights_hat, biases)
    out = jax.block_until_ready(out)

    ref = reference_forward(x, betas, weights_hat, biases)
    assert out.shape == (batch, channels[-1])
    assert jnp.allclose(out, ref, atol=1e-5, rtol=1e-5), "mismatch vs reference"

    print("KERNEL_OK")
</pallas_src>

<mosaic_0001>
module attributes {stable_mosaic.version = 11 : i64} {
  func.func @kernel(%arg0: i32, %arg1: memref<16x128xf32, #tpu.memory_space<vmem>>, %arg2: memref<3xf32, #tpu.memory_space<smem>>, %arg3: memref<32x16xf32, #tpu.memory_space<vmem>>, %arg4: memref<32x1xf32, #tpu.memory_space<vmem>>, %arg5: memref<32x32xf32, #tpu.memory_space<vmem>>, %arg6: memref<32x1xf32, #tpu.memory_space<vmem>>, %arg7: memref<16x32xf32, #tpu.memory_space<vmem>>, %arg8: memref<16x1xf32, #tpu.memory_space<vmem>>, %arg9: memref<16x128xf32, #tpu.memory_space<vmem>>) attributes {dimension_semantics = [#tpu.dimension_semantics<parallel>], iteration_bounds = array<i64: 1>, scalar_prefetch = 0 : i64, scratch_operands = 0 : i64, tpu.core_type = #tpu.core_type<tc>, window_params = [{transform_indices = @transform_0, window_bounds = array<i64: 16, 128>}, {transform_indices = @transform_1, window_bounds = array<i64: 3>}, {pipeline_mode = #tpu.pipeline_mode<synchronous>, transform_indices = @transform_2, window_bounds = array<i64: 32, 16>}, {pipeline_mode = #tpu.pipeline_mode<synchronous>, transform_indices = @transform_3, window_bounds = array<i64: 32, 1>}, {pipeline_mode = #tpu.pipeline_mode<synchronous>, transform_indices = @transform_4, window_bounds = array<i64: 32, 32>}, {pipeline_mode = #tpu.pipeline_mode<synchronous>, transform_indices = @transform_5, window_bounds = array<i64: 32, 1>}, {pipeline_mode = #tpu.pipeline_mode<synchronous>, transform_indices = @transform_6, window_bounds = array<i64: 16, 32>}, {pipeline_mode = #tpu.pipeline_mode<synchronous>, transform_indices = @transform_7, window_bounds = array<i64: 16, 1>}, {transform_indices = @transform_8, window_bounds = array<i64: 16, 128>}]} {
    %c0 = arith.constant 0 : index
    %c0_0 = arith.constant 0 : index
    %0 = vector.load %arg1[%c0, %c0_0] : memref<16x128xf32, #tpu.memory_space<vmem>>, vector<16x128xf32>
    %c0_1 = arith.constant 0 : index
    %1 = memref.load %arg2[%c0_1] : memref<3xf32, #tpu.memory_space<smem>>
    %2 = vector.broadcast %1 : f32 to vector<16x128xf32>
    %3 = arith.mulf %2, %0 : vector<16x128xf32>
    %cst = arith.constant 0.000000e+00 : f32
    %4 = vector.broadcast %cst : f32 to vector<16x128xf32>
    %5 = arith.subf %4, %3 : vector<16x128xf32>
    %6 = math.exp %5 : vector<16x128xf32>
    %cst_2 = arith.constant 1.000000e+00 : f32
    %7 = vector.broadcast %cst_2 : f32 to vector<16x128xf32>
    %8 = arith.addf %7, %6 : vector<16x128xf32>
    %cst_3 = arith.constant 1.000000e+00 : f32
    %9 = vector.broadcast %cst_3 : f32 to vector<16x128xf32>
    %10 = arith.divf %9, %8 : vector<16x128xf32>
    %11 = arith.mulf %0, %10 : vector<16x128xf32>
    %c0_4 = arith.constant 0 : index
    %c0_5 = arith.constant 0 : index
    %12 = vector.load %arg3[%c0_4, %c0_5] : memref<32x16xf32, #tpu.memory_space<vmem>>, vector<32x16xf32>
    %cst_6 = arith.constant dense<0.000000e+00> : vector<32x128xf32>
    %13 = tpu.matmul %12, %11, %cst_6 {dimension_numbers = #tpu.dot_dimension_numbers<[1], [0], [0], [1], [0, 0, 1, 1], [], []>} : vector<32x16xf32>, vector<16x128xf32>, vector<32x128xf32> -> vector<32x128xf32>
    %c0_7 = arith.constant 0 : index
    %c0_8 = arith.constant 0 : index
    %14 = vector.load %arg4[%c0_7, %c0_8] : memref<32x1xf32, #tpu.memory_space<vmem>>, vector<32x1xf32>
    %15 = vector.broadcast %14 : vector<32x1xf32> to vector<32x128xf32>
    %16 = arith.addf %13, %15 : vector<32x128xf32>
    %c1 = arith.constant 1 : index
    %17 = memref.load %arg2[%c1] : memref<3xf32, #tpu.memory_space<smem>>
    %18 = vector.broadcast %17 : f32 to vector<32x128xf32>
    %19 = arith.mulf %18, %16 : vector<32x128xf32>
    %cst_9 = arith.constant 0.000000e+00 : f32
    %20 = vector.broadcast %cst_9 : f32 to vector<32x128xf32>
    %21 = arith.subf %20, %19 : vector<32x128xf32>
    %22 = math.exp %21 : vector<32x128xf32>
    %cst_10 = arith.constant 1.000000e+00 : f32
    %23 = vector.broadcast %cst_10 : f32 to vector<32x128xf32>
    %24 = arith.addf %23, %22 : vector<32x128xf32>
    %cst_11 = arith.constant 1.000000e+00 : f32
    %25 = vector.broadcast %cst_11 : f32 to vector<32x128xf32>
    %26 = arith.divf %25, %24 : vector<32x128xf32>
    %27 = arith.mulf %16, %26 : vector<32x128xf32>
    %c0_12 = arith.constant 0 : index
    %c0_13 = arith.constant 0 : index
    %28 = vector.load %arg5[%c0_12, %c0_13] : memref<32x32xf32, #tpu.memory_space<vmem>>, vector<32x32xf32>
    %cst_14 = arith.constant dense<0.000000e+00> : vector<32x128xf32>
    %29 = tpu.matmul %28, %27, %cst_14 {dimension_numbers = #tpu.dot_dimension_numbers<[1], [0], [0], [1], [0, 0, 1, 1], [], []>} : vector<32x32xf32>, vector<32x128xf32>, vector<32x128xf32> -> vector<32x128xf32>
    %c0_15 = arith.constant 0 : index
    %c0_16 = arith.constant 0 : index
    %30 = vector.load %arg6[%c0_15, %c0_16] : memref<32x1xf32, #tpu.memory_space<vmem>>, vector<32x1xf32>
    %31 = vector.broadcast %30 : vector<32x1xf32> to vector<32x128xf32>
    %32 = arith.addf %29, %31 : vector<32x128xf32>
    %c2 = arith.constant 2 : index
    %33 = memref.load %arg2[%c2] : memref<3xf32, #tpu.memory_space<smem>>
    %34 = vector.broadcast %33 : f32 to vector<32x128xf32>
    %35 = arith.mulf %34, %32 : vector<32x128xf32>
    %cst_17 = arith.constant 0.000000e+00 : f32
    %36 = vector.broadcast %cst_17 : f32 to vector<32x128xf32>
    %37 = arith.subf %36, %35 : vector<32x128xf32>
    %38 = math.exp %37 : vector<32x128xf32>
    %cst_18 = arith.constant 1.000000e+00 : f32
    %39 = vector.broadcast %cst_18 : f32 to vector<32x128xf32>
    %40 = arith.addf %39, %38 : vector<32x128xf32>
    %cst_19 = arith.constant 1.000000e+00 : f32
    %41 = vector.broadcast %cst_19 : f32 to vector<32x128xf32>
    %42 = arith.divf %41, %40 : vector<32x128xf32>
    %43 = arith.mulf %32, %42 : vector<32x128xf32>
    %c0_20 = arith.constant 0 : index
    %c0_21 = arith.constant 0 : index
    %44 = vector.load %arg7[%c0_20, %c0_21] : memref<16x32xf32, #tpu.memory_space<vmem>>, vector<16x32xf32>
    %cst_22 = arith.constant dense<0.000000e+00> : vector<16x128xf32>
    %45 = tpu.matmul %44, %43, %cst_22 {dimension_numbers = #tpu.dot_dimension_numbers<[1], [0], [0], [1], [0, 0, 1, 1], [], []>} : vector<16x32xf32>, vector<32x128xf32>, vector<16x128xf32> -> vector<16x128xf32>
    %c0_23 = arith.constant 0 : index
    %c0_24 = arith.constant 0 : index
    %46 = vector.load %arg8[%c0_23, %c0_24] : memref<16x1xf32, #tpu.memory_space<vmem>>, vector<16x1xf32>
    %47 = vector.broadcast %46 : vector<16x1xf32> to vector<16x128xf32>
    %48 = arith.addf %45, %47 : vector<16x128xf32>
    %c0_25 = arith.constant 0 : index
    %c0_26 = arith.constant 0 : index
    %49 = vector.load %arg9[%c0_25, %c0_26] : memref<16x128xf32, #tpu.memory_space<vmem>>, vector<16x128xf32>
    tpu.vector_store %arg9[%c0_25, %c0_26], %48 {strides = array<i32>} : memref<16x128xf32, #tpu.memory_space<vmem>>, vector<16x128xf32>,
    return
  }
  func.func @transform_0(%arg0: i32) -> (i32, i32) {
    %c0_i32 = arith.constant 0 : i32
    %c0_i32_0 = arith.constant 0 : i32
    return %c0_i32, %arg0 : i32, i32
  }
  func.func @transform_1(%arg0: i32) -> i32 {
    %c0_i32 = arith.constant 0 : i32
    %c0_i32_0 = arith.constant 0 : i32
    return %c0_i32 : i32
  }
  func.func @transform_2(%arg0: i32) -> (i32, i32) {
    %c0_i32 = arith.constant 0 : i32
    %c0_i32_0 = arith.constant 0 : i32
    %c0_i32_1 = arith.constant 0 : i32
    return %c0_i32, %c0_i32_0 : i32, i32
  }
  func.func @transform_3(%arg0: i32) -> (i32, i32) {
    %c0_i32 = arith.constant 0 : i32
    %c0_i32_0 = arith.constant 0 : i32
    %c0_i32_1 = arith.constant 0 : i32
    return %c0_i32, %c0_i32_0 : i32, i32
  }
  func.func @transform_4(%arg0: i32) -> (i32, i32) {
    %c0_i32 = arith.constant 0 : i32
    %c0_i32_0 = arith.constant 0 : i32
    %c0_i32_1 = arith.constant 0 : i32
    return %c0_i32, %c0_i32_0 : i32, i32
  }
  func.func @transform_5(%arg0: i32) -> (i32, i32) {
    %c0_i32 = arith.constant 0 : i32
    %c0_i32_0 = arith.constant 0 : i32
    %c0_i32_1 = arith.constant 0 : i32
    return %c0_i32, %c0_i32_0 : i32, i32
  }
  func.func @transform_6(%arg0: i32) -> (i32, i32) {
    %c0_i32 = arith.constant 0 : i32
    %c0_i32_0 = arith.constant 0 : i32
    %c0_i32_1 = arith.constant 0 : i32
    return %c0_i32, %c0_i32_0 : i32, i32
  }
  func.func @transform_7(%arg0: i32) -> (i32, i32) {
    %c0_i32 = arith.constant 0 : i32
    %c0_i32_0 = arith.constant 0 : i32
    %c0_i32_1 = arith.constant 0 : i32
    return %c0_i32, %c0_i32_0 : i32, i32
  }
  func.func @transform_8(%arg0: i32) -> (i32, i32) {
    %c0_i32 = arith.constant 0 : i32
    %c0_i32_0 = arith.constant 0 : i32
    return %c0_i32, %arg0 : i32, i32
  }
}

</mosaic_0001>

<bundles_post_ra>
// kernel: tpu_custom_call.1
= control target key start
LH: loop header
LB: loop body
LE: loop exit
PB: predicated region body
PF: predicated region fallthrough
CT: control target
= control target key end

     0   :  { %13 = vsyncpa [#allocation4], 0  ;;  %s810_s0 = inlined_call_operand.vmem [shape: f32[16,128], index: 0, kind: input, shape index: {}]   ;;  %s811_s1 = inlined_call_operand.vmem [shape: f32[3], index: 1, kind: input, shape index: {}]   ;;  %s812_s2 = inlined_call_operand.vmem [shape: f32[32,16], index: 2, kind: input, shape index: {}]   ;;  %s813_s3 = inlined_call_operand.vmem [shape: f32[32,1], index: 3, kind: input, shape index: {}]   ;;  %s814_s4 = inlined_call_operand.vmem [shape: f32[32,32], index: 4, kind: input, shape index: {}]   ;;  %s815_s5 = inlined_call_operand.vmem [shape: f32[32,1], index: 5, kind: input, shape index: {}]   ;;  %s816_s6 = inlined_call_operand.vmem [shape: f32[16,32], index: 6, kind: input, shape index: {}]   ;;  %s817_s7 = inlined_call_operand.vmem [shape: f32[16,1], index: 7, kind: input, shape index: {}]   ;;  %s818_s8 = inlined_call_operand.hbm [shape: f32[16,128], index: 8, kind: output, shape index: {}]  }
   0x1   :  { %14 = vsyncpa [#allocation3], 0  ;;  %s23_s29 = sshll.u32 %s811_s1, 4  ;;  %s24_s29 = int_to_ptr.vmem [resolvable:$true] %s23_s29 }
   0x2   :  { %s631_s30 = scalar_lea.vmem %s24_s29, 16  ;;  %p636_p1 = scmp.lt.s32.totalorder %s24_s29, %s24_s29 }
   0x3   :  { %p632_p0 = scmp.ne.s32.totalorder %s24_s29, %s631_s30  ;;  %p637_p2 = scmp.lt.s32.totalorder %s631_s30, %s631_s30 }
   0x5   :  { %p638_p3 = por %p637_p2, %p636_p1 }
   0x7   :  { %p639_p4 = pnand %p638_p3, %p632_p0 }
   0x9   :  { %642 = shalt.err (!%p639_p4)
}
   0xa   :  { %s669_s9 = smov [#allocation2]  }
   0xb   :  { %26 = dma.vmem_to_smem %s24_s29, 16, %s669_s9, [#allocation4]  }
   0xc   :  { %665 = dma.done.wait [#allocation4], 16  }
   0xd   :  { %666 = vsyncadd [#allocation4], 4294967280 }
   0xe   :  { %42 = sfence }
   0xf   :  { %s45_s10 = sld [smem:[#allocation2]]  ;;  %v63_v0 = vld [vmem:[%s812_s2] sm:$0xff]  ;;  %vm91_vm0 = vcmask 130048   ;;  %v670_v1 = vmov 0   ;;  %v69_v3 = vld [vmem:[%s813_s3 + $0x10] sm:$0xff]  ;;  %v44_v5 = vld [vmem:[%s810_s0 + $0x8] sm:$0xff] }
  0x10   :  { %533 = vmatprep.mubr.msk.f32.mxu0 %vm91_vm0, %v63_v0  ;;  %589 = vset.pattern.permute.xlu0 %v670_v1  ;;  %v67_v2 = vld [vmem:[%s813_s3] sm:$0xff]  ;;  %v68_v6 = vld [vmem:[%s813_s3 + $0x8] sm:$0xff]  ;;  %v70_v7 = vld [vmem:[%s813_s3 + $0x18] sm:$0xff]  ;;  %vm251_vm1 = vcmask 261120   ;;  %s501_s17 = sld [smem:[#allocation2 + $0x1]]  ;;  %s506_s25 = sld [smem:[#allocation2 + $0x2]] }
  0x11   :  { %590 = vset.pattern.permute.xlu1 %v670_v1  ;;  %v43_v4 = vld [vmem:[%s810_s0] sm:$0xff]  ;;  %73 = vperm.xlu0 %589, %v67_v2   ;;  %v228_v12 = vld [vmem:[%s815_s5 + $0x8] sm:$0xff]  ;;  %v229_v17 = vld [vmem:[%s815_s5 + $0x10] sm:$0xff]  ;;  %s671_s27 = smov [#allocation5]  }
  0x12   :  { %83 = vperm.xlu1 %590, %v69_v3   ;;  %v227_v11 = vld [vmem:[%s815_s5] sm:$0xff]  ;;  %v230_v18 = vld [vmem:[%s815_s5 + $0x18] sm:$0xff]  ;;  %v386_v20 = vld [vmem:[%s817_s7 + $0x8] sm:$0xff]  ;;  %s485_s0 = sshll.u32 %s671_s27, 4  ;;  %s486_s0 = int_to_ptr.vmem [resolvable:$true] %s485_s0 }
  0x13   :  { %v385_v19 = vld [vmem:[%s817_s7] sm:$0xff]  ;;  %v64_v30 = vld [vmem:[%s812_s2 + $0x8] sm:$0xff]  ;;  %v65_v31 = vld [vmem:[%s812_s2 + $0x10] sm:$0xff]  ;;  %s643_s3 = scalar_lea.vmem %s486_s0, 256  ;;  %p648_p6 = scmp.lt.s32.totalorder %s486_s0, %s486_s0 }
  0x14   :  { %v66_v32 = vld [vmem:[%s812_s2 + $0x18] sm:$0xff]  ;;  %v223_v33 = vld [vmem:[%s814_s4] sm:$0xff]  ;;  %p644_p5 = scmp.ne.s32.totalorder %s486_s0, %s643_s3  ;;  %p649_p7 = scmp.lt.s32.totalorder %s643_s3, %s643_s3 }
  0x15   :  { %v46_v8 = vstv %s45_s10  ;;  %78 = vperm.xlu0 %589, %v68_v6   ;;  %547 = vmatprep.mubr.msk.f32.mxu1 %vm251_vm1, %v223_v33 }
  0x16   :  { %v47_v9 = vmul.f32 %v46_v8, %v43_v4  ;;  %v48_v10 = vmul.f32 %v46_v8, %v44_v5  ;;  %88 = vperm.xlu1 %590, %v70_v7   ;;  %v190_v38 = vstv %s501_s17  ;;  %p650_p8 = por %p649_p7, %p648_p6 }
  0x18   :  { %v49_v13 = vsub.f32 0.0, %v47_v9  ;;  %v50_v14 = vsub.f32 0.0, %v48_v10  ;;  %p651_p9 = pnand %p650_p8, %p644_p5 }
  0x19   :  { %233 = vperm.xlu0 %589, %v227_v11  }
  0x1a   :  { %v51_v15 = vmul.f32 1.442695, %v49_v13  ;;  %v53_v16 = vmul.f32 1.442695, %v50_v14  ;;  %238 = vperm.xlu1 %590, %v228_v12   ;;  %v224_v13 = vld [vmem:[%s814_s4 + $0x8] sm:$0xff]  ;;  %v225_v14 = vld [vmem:[%s814_s4 + $0x10] sm:$0xff] }
  0x1c   :  { %591 = vpow2.f32 %v51_v15  ;;  %v226_v15 = vld [vmem:[%s814_s4 + $0x18] sm:$0xff] }
  0x1d   :  { %593 = vpow2.f32 %v53_v16  ;;  %243 = vperm.xlu0 %589, %v229_v17   ;;  %v383_v16 = vld [vmem:[%s816_s6] sm:$0xff] }
  0x1e   :  { %248 = vperm.xlu1 %590, %v230_v18  }
  0x21   :  { %389 = vperm.xlu0 %589, %v385_v19  }
  0x22   :  { %394 = vperm.xlu1 %590, %v386_v20   ;;  %v350_v20 = vstv %s506_s25 }
  0x26   :  { %v592_v21 = vpop.eup %591 }
  0x27   :  { %v594_v22 = vpop.eup %593  ;;  %v55_v23 = vadd.f32 1.0, %v592_v21 }
  0x28   :  { %v56_v24 = vadd.f32 1.0, %v594_v22 }
  0x29   :  { %595 = vrcp.f32 %v55_v23 }
  0x2a   :  { %597 = vrcp.f32 %v56_v24 }
  0x33   :  { %v596_v25 = vpop.eup %595 }
  0x34   :  { %v598_v26 = vpop.eup %597  ;;  %v61_v27 = vmul.f32 %v596_v25, %v43_v4 }
  0x35   :  { %v62_v28 = vmul.f32 %v598_v26, %v44_v5 }
  0x37   :  { %v564_v29 = vpack.c.bf16 %v62_v28, %v61_v27 }
  0x39   :  { %565 = vmatprep.subr.bf16.mxu0 %v564_v29 }
  0x3a   :  { %567 = vmatpush3.bf16.msra.mxu0 %v564_v29 }
  0x3d   :  { %534 = vmatmul.mubr.msk.f32.vlgmr.msra.gmra.mrb[0].mxu0 %vm91_vm0, %v64_v30 }
  0x3e   :  { %536 = vmatprep.mubr.msk.f32.mxu0 %vm91_vm0, %v65_v31 }
  0x41   :  { %537 = vmatmul.mubr.msk.f32.gmra.mrb[2].mxu0 %vm91_vm0, %v66_v32 }
  0x42   :  { %561 = vmatprep.mubr.msk.f32.mxu0 %vm251_vm1, %v383_v16 }
  0x90   :  { %v74_v34 = vpop.permute.xlu0 %73 }
  0x91   :  { %v84_v35 = vpop.permute.xlu1 %83 }
  0x94   :  { %v79_v36 = vpop.permute.xlu0 %78 }
  0x95   :  { %v89_v43 = vpop.permute.xlu1 %88 }
  0x98   :  { %v234_v18 = vpop.permute.xlu0 %233 }
  0x99   :  { %v239_v17 = vpop.permute.xlu1 %238 }
  0x9c   :  { %v244_v28 = vpop.permute.xlu0 %243 }
  0x9d   :  { %v249_v25 = vpop.permute.xlu1 %248 }
 0x110   :  { %v535_v37 = vpop.f32.mrb[0].mxu0 }
 0x111   :  { %v176_v39 = vadd.f32 %v535_v37, %v79_v36  ;;  %v170_v40 = vpop.f32.mrb[1].mxu0 }
 0x112   :  { %v171_v41 = vadd.f32 %v170_v40, %v74_v34 }
 0x113   :  { %v192_v42 = vmul.f32 %v190_v38, %v176_v39 }
 0x114   :  { %v191_v44 = vmul.f32 %v190_v38, %v171_v41  ;;  %v538_v45 = vpop.f32.mrb[2].mxu0 }
 0x115   :  { %v196_v46 = vsub.f32 0.0, %v192_v42  ;;  %v186_v47 = vadd.f32 %v538_v45, %v89_v43  ;;  %v180_v48 = vpop.f32.mrb[3].mxu0 }
 0x116   :  { %v195_v49 = vsub.f32 0.0, %v191_v44  ;;  %v181_v50 = vadd.f32 %v180_v48, %v84_v35 }
 0x117   :  { %v201_v51 = vmul.f32 1.442695, %v196_v46  ;;  %v194_v52 = vmul.f32 %v190_v38, %v186_v47 }
 0x118   :  { %v199_v53 = vmul.f32 1.442695, %v195_v49  ;;  %v193_v54 = vmul.f32 %v190_v38, %v181_v50 }
 0x119   :  { %599 = vpow2.f32 %v201_v51  ;;  %v198_v55 = vsub.f32 0.0, %v194_v52 }
 0x11a   :  { %601 = vpow2.f32 %v199_v53  ;;  %v197_v56 = vsub.f32 0.0, %v193_v54 }
 0x11b   :  { %v205_v57 = vmul.f32 1.442695, %v198_v55 }
 0x11c   :  { %v203_v58 = vmul.f32 1.442695, %v197_v56 }
 0x11d   :  { %603 = vpow2.f32 %v205_v57 }
 0x11e   :  { %605 = vpow2.f32 %v203_v58 }
 0x123   :  { %v600_v59 = vpop.eup %599 }
 0x124   :  { %v602_v60 = vpop.eup %601  ;;  %v208_v61 = vadd.f32 1.0, %v600_v59 }
 0x125   :  { %v207_v62 = vadd.f32 1.0, %v602_v60  ;;  %v384_v60 = vld [vmem:[%s816_s6 + $0x8] sm:$0xff] }
 0x126   :  { %607 = vrcp.f32 %v208_v61  ;;  %v395_v61 = vpop.permute.xlu1 %394 }
 0x127   :  { %v604_v63 = vpop.eup %603  ;;  %609 = vrcp.f32 %v207_v62 }
 0x128   :  { %v606_v0 = vpop.eup %605  ;;  %v210_v1 = vadd.f32 1.0, %v604_v63  ;;  %v390_v63 = vpop.permute.xlu0 %389 }
 0x129   :  { %v209_v2 = vadd.f32 1.0, %v606_v0 }
 0x12a   :  { %611 = vrcp.f32 %v210_v1 }
 0x12b   :  { %613 = vrcp.f32 %v209_v2 }
 0x130   :  { %v608_v3 = vpop.eup %607 }
 0x131   :  { %v610_v4 = vpop.eup %609  ;;  %v220_v5 = vmul.f32 %v608_v3, %v176_v39 }
 0x132   :  { %v219_v6 = vmul.f32 %v610_v4, %v171_v41 }
 0x134   :  { %v612_v7 = vpop.eup %611  ;;  %v568_v8 = vpack.c.bf16 %v220_v5, %v219_v6 }
 0x135   :  { %v614_v9 = vpop.eup %613  ;;  %v222_v10 = vmul.f32 %v612_v7, %v186_v47 }
 0x136   :  { %v221_v11 = vmul.f32 %v614_v9, %v181_v50  ;;  %569 = vmatprep.subr.bf16.mxu1 %v568_v8 }
 0x137   :  { %571 = vmatpush3.bf16.msra.mxu1 %v568_v8 }
 0x138   :  { %v572_v12 = vpack.c.bf16 %v222_v10, %v221_v11 }
 0x13a   :  { %573 = vmatprep.subr.bf16.mxu1 %v572_v12 }
 0x13b   :  { %575 = vmatpush3.bf16.msra.mxu1 %v572_v12 }
 0x13e   :  { %548 = vmatmul.mubr.msk.f32.vlgmr.msra.gmra.mrb[0].mxu1 %vm251_vm1, %v224_v13 }
 0x13f   :  { %550 = vmatprep.mubr.msk.f32.mxu1 %vm251_vm1, %v225_v14 }
 0x142   :  { %551 = vmatmul.mubr.msk.f32.gmra.mrb[2].mxu1 %vm251_vm1, %v226_v15 }
 0x211   :  { %v549_v19 = vpop.f32.mrb[0].mxu1 }
 0x212   :  { %v336_v21 = vadd.f32 %v549_v19, %v239_v17  ;;  %v330_v22 = vpop.f32.mrb[1].mxu1 }
 0x213   :  { %v331_v23 = vadd.f32 %v330_v22, %v234_v18 }
 0x214   :  { %v352_v24 = vmul.f32 %v350_v20, %v336_v21 }
 0x215   :  { %v351_v26 = vmul.f32 %v350_v20, %v331_v23  ;;  %v552_v27 = vpop.f32.mrb[2].mxu1 }
 0x216   :  { %v356_v29 = vsub.f32 0.0, %v352_v24  ;;  %v346_v30 = vadd.f32 %v552_v27, %v249_v25  ;;  %v340_v31 = vpop.f32.mrb[3].mxu1 }
 0x217   :  { %v355_v32 = vsub.f32 0.0, %v351_v26  ;;  %v341_v33 = vadd.f32 %v340_v31, %v244_v28 }
 0x218   :  { %v361_v34 = vmul.f32 1.442695, %v356_v29  ;;  %v354_v35 = vmul.f32 %v350_v20, %v346_v30 }
 0x219   :  { %v359_v36 = vmul.f32 1.442695, %v355_v32  ;;  %v353_v37 = vmul.f32 %v350_v20, %v341_v33 }
 0x21a   :  { %615 = vpow2.f32 %v361_v34  ;;  %v358_v38 = vsub.f32 0.0, %v354_v35 }
 0x21b   :  { %617 = vpow2.f32 %v359_v36  ;;  %v357_v39 = vsub.f32 0.0, %v353_v37 }
 0x21c   :  { %v365_v40 = vmul.f32 1.442695, %v358_v38 }
 0x21d   :  { %v363_v41 = vmul.f32 1.442695, %v357_v39 }
 0x21e   :  { %619 = vpow2.f32 %v365_v40 }
 0x21f   :  { %621 = vpow2.f32 %v363_v41 }
 0x224   :  { %v616_v42 = vpop.eup %615 }
 0x225   :  { %v618_v43 = vpop.eup %617  ;;  %v368_v44 = vadd.f32 1.0, %v616_v42 }
 0x226   :  { %v367_v45 = vadd.f32 1.0, %v618_v43 }
 0x227   :  { %623 = vrcp.f32 %v368_v44 }
 0x228   :  { %v620_v46 = vpop.eup %619  ;;  %625 = vrcp.f32 %v367_v45 }
 0x229   :  { %v622_v47 = vpop.eup %621  ;;  %v370_v48 = vadd.f32 1.0, %v620_v46 }
 0x22a   :  { %v369_v49 = vadd.f32 1.0, %v622_v47 }
 0x22b   :  { %627 = vrcp.f32 %v370_v48 }
 0x22c   :  { %629 = vrcp.f32 %v369_v49 }
 0x231   :  { %v624_v50 = vpop.eup %623 }
 0x232   :  { %v626_v51 = vpop.eup %625  ;;  %v380_v52 = vmul.f32 %v624_v50, %v336_v21 }
 0x233   :  { %v379_v53 = vmul.f32 %v626_v51, %v331_v23 }
 0x235   :  { %v628_v54 = vpop.eup %627  ;;  %v576_v55 = vpack.c.bf16 %v380_v52, %v379_v53 }
 0x236   :  { %v630_v56 = vpop.eup %629  ;;  %v382_v57 = vmul.f32 %v628_v54, %v346_v30 }
 0x237   :  { %v381_v58 = vmul.f32 %v630_v56, %v341_v33  ;;  %577 = vmatprep.subr.bf16.mxu0 %v576_v55 }
 0x238   :  { %579 = vmatpush3.bf16.msra.mxu0 %v576_v55 }
 0x239   :  { %v580_v59 = vpack.c.bf16 %v382_v57, %v381_v58 }
 0x23b   :  { %581 = vmatprep.subr.bf16.mxu0 %v580_v59 }
 0x23c   :  { %583 = vmatpush3.bf16.msra.mxu0 %v580_v59 }
 0x23f   :  { %562 = vmatmul.mubr.msk.f32.vlgmr.msra.gmra.mrb[4].mxu0 %vm251_vm1, %v384_v60 }
 0x312   :  { %v563_v62 = vpop.f32.mrb[4].mxu0 }
 0x313   :  { %v475_v0 = vadd.f32 %v563_v62, %v395_v61  ;;  %v469_v1 = vpop.f32.mrb[5].mxu0 }
 0x314   :  { %v470_v2 = vadd.f32 %v469_v1, %v390_v63 }
 0x315   :  { %479 = vst [vmem:[#allocation5 + $0x8] sm:$0xff] %v475_v0 }
 0x316   :  { %478 = vst [vmem:[#allocation5] sm:$0xff] %v470_v2 }
 0x317   :  { %654 = shalt.err (!%p651_p9)
}
 0x318   :  { %s655_s29 = scalar_lea.hbm %s818_s8, 256 }
 0x319   :  { %p656_p10 = scmp.ne.s32.totalorder %s818_s8, %s655_s29  ;;  %p659_p11 = scmp.lt.u32.totalorder %s655_s29, %s818_s8 }
 0x31b   :  { %p661_p12 = pnand %p659_p11, %p656_p10 }
 0x31d   :  { %664 = shalt.err (!%p661_p12)
}
 0x31e   :  { %s672_s5 = smov 128   ;;  %s673_s12 = smov 8  }
 0x31f   :  { %491 = dma.vmem_to_hbm [thread:$0]  %s486_s0, 256, %s818_s8, [#allocation3], %s672_s5, %s672_s5, %s673_s12  }
 0x320   :  { %667 = dma.done.wait [#allocation3], 256  }
 0x321   :  { %668 = vsyncadd [#allocation3], 4294967040 }
 0x322   :  { %495 = vsyncpa [#allocation3], 1 }
 0x323   :  { %496 = vsyncpa [#allocation4], 1 }

</bundles_post_ra>
